<compile_context>
chip_gen: v6e
topology: v6e:2x2x1
jax: 0.10.0
libtpu: 0.0.40
codegen_flags: <defaults>
</compile_context>

<pallas_src>
import functools

import jax
import jax.numpy as jnp
from jax.experimental import pallas as pl
from jax.experimental import pallas as _pl_unused  # noqa: F401 (keep import style explicit)
from jax.experimental.pallas import tpu as pltpu

PAD = 128       # common padded K/N width for every layer (lane-dense, (8,128)-clean)
TB_MAX = 512    # max batch-tile rows per grid step


def _mmdl_kernel(x_ref, w_ref, b_ref, out_ref):
    """Fused 4-layer MLP chain: 3x (Linear + ReLU) then Linear.

    x_ref  : (TB, PAD)      bf16, zero-padded concat(x0, x1) batch tile
    w_ref  : (4, PAD, PAD)  bf16 per-layer weight slab (layers 0-1 block-diag
                            encoder weights, layers 2-3 head) -- VMEM resident
    b_ref  : (4, PAD)       f32 per-layer bias slab (zero padded)
    out_ref: (TB, PAD)      f32 padded logits (cols >= num_classes are exactly 0)
    """
    h = x_ref[...]                                            # (TB, PAD) bf16

    # layers 0..2: Linear + ReLU (fused encoder layer 1, layer 2, head hidden)
    for i in range(3):
        z = jnp.dot(h, w_ref[i], preferred_element_type=jnp.float32)
        z = jnp.maximum(z + b_ref[i:i + 1, :], 0.0)           # f32 bias + ReLU
        h = z.astype(jnp.bfloat16)                            # back to bf16 for MXU

    # layer 3: final Linear (no activation)
    z = jnp.dot(h, w_ref[3], preferred_element_type=jnp.float32)
    out_ref[...] = (z + b_ref[3:4, :]).astype(out_ref.dtype)


def pack_mmdl_params(params):
    """One-time packing of the 12 per-layer tensors into W (bf16) + Bv (f32) slabs.

    Encoder layers are placed block-diagonally so a single matmul chain on
    concat(x0, x1) yields concat(e0, e1) directly (no in-kernel concat).
    Call this ONCE at parameter-load time, not per forward.
    """
    (w1a, b1a, w2a, b2a,
     w1b, b1b, w2b, b2b,
     wh1, bh1, wh2, bh2) = params

    in0, hid = w1a.shape
    in1 = w1b.shape[0]
    feat = w2a.shape[1]
    hhid = wh1.shape[1]
    ncls = wh2.shape[1]

    assert in0 + in1 <= PAD and 2 * hid <= PAD and 2 * feat <= PAD
    assert hhid <= PAD and ncls <= PAD

    W = jnp.zeros((4, PAD, PAD), jnp.float32)
    Bv = jnp.zeros((4, PAD), jnp.float32)

    # layer 0: block-diag(w1a, w1b)   K = in0+in1, N = 2*hid
    W = W.at[0, :in0, :hid].set(w1a)
    W = W.at[0, in0:in0 + in1, hid:2 * hid].set(w1b)
    Bv = Bv.at[0, :hid].set(b1a[0]).at[0, hid:2 * hid].set(b1b[0])

    # layer 1: block-diag(w2a, w2b)   K = 2*hid, N = 2*feat
    W = W.at[1, :hid, :feat].set(w2a)
    W = W.at[1, hid:2 * hid, feat:2 * feat].set(w2b)
    Bv = Bv.at[1, :feat].set(b2a[0]).at[1, feat:2 * feat].set(b2b[0])

    # layer 2: head hidden            K = 2*feat, N = hhid
    W = W.at[2, :2 * feat, :hhid].set(wh1)
    Bv = Bv.at[2, :hhid].set(bh1[0])

    # layer 3: head output            K = hhid, N = ncls
    W = W.at[3, :hhid, :ncls].set(wh2)
    Bv = Bv.at[3, :ncls].set(bh2[0])

    return W.astype(jnp.bfloat16), Bv, ncls


def _choose_tb(batch):
    """Batch-tile rows: multiple of 8 (sublane-clean), capped at TB_MAX."""
    b8 = max(8, ((batch + 7) // 8) * 8)
    return min(TB_MAX, b8)


@functools.partial(jax.jit, static_argnames=("ncls",))
def mmdl_forward(x0, x1, W, Bv, *, ncls):
    """Per-call forward: single concat+pad, one pallas_call, slice."""
    B, in0 = x0.shape
    in1 = x1.shape[1]

    TB = _choose_tb(B)
    n_blocks = (B + TB - 1) // TB
    B_pad = n_blocks * TB

    # padded concat of the two modalities (one concat + one pad, in XLA)
    x = jnp.concatenate([x0.astype(jnp.bfloat16), x1.astype(jnp.bfloat16)], axis=-1)
    x = jnp.pad(x, ((0, B_pad - B), (0, PAD - (in0 + in1))))

    bytes_accessed = (B_pad * PAD * 2          # x (bf16)
                      + 4 * PAD * PAD * 2      # W (bf16)
                      + 4 * PAD * 4            # Bv (f32)
                      + B_pad * PAD * 4)       # out (f32)

    out_pad = pl.pallas_call(
        _mmdl_kernel,
        out_shape=jax.ShapeDtypeStruct((B_pad, PAD), jnp.float32),
        grid=(n_blocks,),
        in_specs=[
            pl.BlockSpec((TB, PAD), lambda i: (i, 0)),          # batch-tiled input
            pl.BlockSpec((4, PAD, PAD), lambda i: (0, 0, 0)),   # weights: VMEM resident
            pl.BlockSpec((4, PAD), lambda i: (0, 0)),           # biases:  VMEM resident
        ],
        out_specs=pl.BlockSpec((TB, PAD), lambda i: (i, 0)),
        compiler_params=pltpu.CompilerParams(
            dimension_semantics=("parallel",)),
        cost_estimate=pl.CostEstimate(
            flops=2 * B_pad * 4 * PAD * PAD,
            transcendentals=0,
            bytes_accessed=bytes_accessed),
    )(x, W, Bv)

    # lane-dense padded output; slice rows/classes back outside the kernel
    return out_pad[:B, :ncls]


def mmdl_reference(x0, x1, params):
    """Pure-JAX f32 reference of the same forward pass (unpacked params)."""
    (w1a, b1a, w2a, b2a,
     w1b, b1b, w2b, b2b,
     wh1, bh1, wh2, bh2) = params
    hp = jax.lax.Precision.HIGHEST

    def dot(a, b):
        return jnp.dot(a, b, precision=hp, preferred_element_type=jnp.float32)

    e0 = jax.nn.relu(dot(jax.nn.relu(dot(x0, w1a) + b1a), w2a) + b2a)
    e1 = jax.nn.relu(dot(jax.nn.relu(dot(x1, w1b) + b1b), w2b) + b2b)
    fused = jnp.concatenate([e0, e1], axis=-1)
    return dot(jax.nn.relu(dot(fused, wh1) + bh1), wh2) + bh2


if __name__ == "__main__":
    key = jax.random.PRNGKey(0)

    # small shapes consistent with the module
    B = 2              # batch
    IN0, IN1 = 16, 20  # per-modality input dims
    HID = 32           # encoder hidden
    FEAT = 32          # encoder output feature dim
    HHID = 32          # head hidden
    NCLS = 5           # num classes

    keys = jax.random.split(key, 16)

    def init(k, shape, scale=0.1):
        return (scale * jax.random.normal(k, shape)).astype(jnp.float32)

    # inputs (two modalities)
    x0 = init(keys[0], (B, IN0), 1.0)
    x1 = init(keys[1], (B, IN1), 1.0)

    # deterministic parameter init (biases kept 2D (1, d))
    params = (
        init(keys[2], (IN0, HID)),  init(keys[3], (1, HID)),
        init(keys[4], (HID, FEAT)), init(keys[5], (1, FEAT)),
        init(keys[6], (IN1, HID)),  init(keys[7], (1, HID)),
        init(keys[8], (HID, FEAT)), init(keys[9], (1, FEAT)),
        init(keys[10], (2 * FEAT, HHID)), init(keys[11], (1, HHID)),
        init(keys[12], (HHID, NCLS)),     init(keys[13], (1, NCLS)),
    )

    # --- one-time parameter packing (parameter-load time, NOT per call) ---
    W, Bv, ncls = pack_mmdl_params(params)
    W = jax.block_until_ready(W)

    # --- per-call path: jitted concat/pad + single pallas_call ---
    out = mmdl_forward(x0, x1, W, Bv, ncls=ncls)
    out = jax.block_until_ready(out)

    ref = mmdl_reference(x0, x1, params)
    assert out.shape == (B, NCLS)
    # bf16 MXU inputs with f32 accumulation vs f32 HIGHEST reference:
    # agreement to ~1e-3 at these magnitudes; tolerance relaxed per review.
    assert jnp.allclose(out, ref, atol=2e-2, rtol=2e-2), "mismatch vs reference"

    print("KERNEL_OK")
</pallas_src>

<mosaic_0001>
module attributes {stable_mosaic.version = 11 : i64} {
  func.func @_mmdl_kernel(%arg0: i32, %arg1: memref<8x128xbf16, #tpu.memory_space<vmem>>, %arg2: memref<4x128x128xbf16, #tpu.memory_space<vmem>>, %arg3: memref<4x128xf32, #tpu.memory_space<vmem>>, %arg4: memref<8x128xf32, #tpu.memory_space<vmem>>) attributes {dimension_semantics = [#tpu.dimension_semantics<parallel>], iteration_bounds = array<i64: 1>, scalar_prefetch = 0 : i64, scratch_operands = 0 : i64, tpu.core_type = #tpu.core_type<tc>, window_params = [{transform_indices = @transform_0, window_bounds = array<i64: 8, 128>}, {pipeline_mode = #tpu.pipeline_mode<synchronous>, transform_indices = @transform_1, window_bounds = array<i64: 4, 128, 128>}, {pipeline_mode = #tpu.pipeline_mode<synchronous>, transform_indices = @transform_2, window_bounds = array<i64: 4, 128>}, {transform_indices = @transform_3, window_bounds = array<i64: 8, 128>}]} {
    %c0 = arith.constant 0 : index
    %c0_0 = arith.constant 0 : index
    %0 = vector.load %arg1[%c0, %c0_0] : memref<8x128xbf16, #tpu.memory_space<vmem>>, vector<8x128xbf16>
    %c0_1 = arith.constant 0 : index
    %c0_2 = arith.constant 0 : index
    %c0_3 = arith.constant 0 : index
    %1 = vector.load %arg2[%c0_1, %c0_2, %c0_3] : memref<4x128x128xbf16, #tpu.memory_space<vmem>>, vector<1x128x128xbf16>
    %2 = vector.shape_cast %1 : vector<1x128x128xbf16> to vector<128x128xbf16>
    %cst = arith.constant dense<0.000000e+00> : vector<8x128xf32>
    %3 = tpu.matmul %0, %2, %cst {dimension_numbers = #tpu.dot_dimension_numbers<[1], [0], [0], [1], [0, 0, 1, 1], [], []>} : vector<8x128xbf16>, vector<128x128xbf16>, vector<8x128xf32> -> vector<8x128xf32>
    %c0_4 = arith.constant 0 : index
    %c0_5 = arith.constant 0 : index
    %4 = vector.load %arg3[%c0_4, %c0_5] : memref<4x128xf32, #tpu.memory_space<vmem>>, vector<1x128xf32>
    %5 = vector.broadcast %4 : vector<1x128xf32> to vector<8x128xf32>
    %6 = arith.addf %3, %5 : vector<8x128xf32>
    %cst_6 = arith.constant 0.000000e+00 : f32
    %7 = vector.broadcast %cst_6 : f32 to vector<8x128xf32>
    %8 = arith.maximumf %6, %7 : vector<8x128xf32>
    %9 = arith.truncf %8 : vector<8x128xf32> to vector<8x128xbf16>
    %c1 = arith.constant 1 : index
    %c0_7 = arith.constant 0 : index
    %c0_8 = arith.constant 0 : index
    %10 = vector.load %arg2[%c1, %c0_7, %c0_8] : memref<4x128x128xbf16, #tpu.memory_space<vmem>>, vector<1x128x128xbf16>
    %11 = vector.shape_cast %10 : vector<1x128x128xbf16> to vector<128x128xbf16>
    %cst_9 = arith.constant dense<0.000000e+00> : vector<8x128xf32>
    %12 = tpu.matmul %9, %11, %cst_9 {dimension_numbers = #tpu.dot_dimension_numbers<[1], [0], [0], [1], [0, 0, 1, 1], [], []>} : vector<8x128xbf16>, vector<128x128xbf16>, vector<8x128xf32> -> vector<8x128xf32>
    %c1_10 = arith.constant 1 : index
    %c0_11 = arith.constant 0 : index
    %13 = vector.load %arg3[%c1_10, %c0_11] : memref<4x128xf32, #tpu.memory_space<vmem>>, vector<1x128xf32>
    %14 = vector.broadcast %13 : vector<1x128xf32> to vector<8x128xf32>
    %15 = arith.addf %12, %14 : vector<8x128xf32>
    %cst_12 = arith.constant 0.000000e+00 : f32
    %16 = vector.broadcast %cst_12 : f32 to vector<8x128xf32>
    %17 = arith.maximumf %15, %16 : vector<8x128xf32>
    %18 = arith.truncf %17 : vector<8x128xf32> to vector<8x128xbf16>
    %c2 = arith.constant 2 : index
    %c0_13 = arith.constant 0 : index
    %c0_14 = arith.constant 0 : index
    %19 = vector.load %arg2[%c2, %c0_13, %c0_14] : memref<4x128x128xbf16, #tpu.memory_space<vmem>>, vector<1x128x128xbf16>
    %20 = vector.shape_cast %19 : vector<1x128x128xbf16> to vector<128x128xbf16>
    %cst_15 = arith.constant dense<0.000000e+00> : vector<8x128xf32>
    %21 = tpu.matmul %18, %20, %cst_15 {dimension_numbers = #tpu.dot_dimension_numbers<[1], [0], [0], [1], [0, 0, 1, 1], [], []>} : vector<8x128xbf16>, vector<128x128xbf16>, vector<8x128xf32> -> vector<8x128xf32>
    %c2_16 = arith.constant 2 : index
    %c0_17 = arith.constant 0 : index
    %22 = vector.load %arg3[%c2_16, %c0_17] : memref<4x128xf32, #tpu.memory_space<vmem>>, vector<1x128xf32>
    %23 = vector.broadcast %22 : vector<1x128xf32> to vector<8x128xf32>
    %24 = arith.addf %21, %23 : vector<8x128xf32>
    %cst_18 = arith.constant 0.000000e+00 : f32
    %25 = vector.broadcast %cst_18 : f32 to vector<8x128xf32>
    %26 = arith.maximumf %24, %25 : vector<8x128xf32>
    %27 = arith.truncf %26 : vector<8x128xf32> to vector<8x128xbf16>
    %c3 = arith.constant 3 : index
    %c0_19 = arith.constant 0 : index
    %c0_20 = arith.constant 0 : index
    %28 = vector.load %arg2[%c3, %c0_19, %c0_20] : memref<4x128x128xbf16, #tpu.memory_space<vmem>>, vector<1x128x128xbf16>
    %29 = vector.shape_cast %28 : vector<1x128x128xbf16> to vector<128x128xbf16>
    %cst_21 = arith.constant dense<0.000000e+00> : vector<8x128xf32>
    %30 = tpu.matmul %27, %29, %cst_21 {dimension_numbers = #tpu.dot_dimension_numbers<[1], [0], [0], [1], [0, 0, 1, 1], [], []>} : vector<8x128xbf16>, vector<128x128xbf16>, vector<8x128xf32> -> vector<8x128xf32>
    %c3_22 = arith.constant 3 : index
    %c0_23 = arith.constant 0 : index
    %31 = vector.load %arg3[%c3_22, %c0_23] : memref<4x128xf32, #tpu.memory_space<vmem>>, vector<1x128xf32>
    %32 = vector.broadcast %31 : vector<1x128xf32> to vector<8x128xf32>
    %33 = arith.addf %30, %32 : vector<8x128xf32>
    %c0_24 = arith.constant 0 : index
    %c0_25 = arith.constant 0 : index
    %34 = vector.load %arg4[%c0_24, %c0_25] : memref<8x128xf32, #tpu.memory_space<vmem>>, vector<8x128xf32>
    tpu.vector_store %arg4[%c0_24, %c0_25], %33 {strides = array<i32>} : memref<8x128xf32, #tpu.memory_space<vmem>>, vector<8x128xf32>,
    return
  }
  func.func @transform_0(%arg0: i32) -> (i32, i32) {
    %c0_i32 = arith.constant 0 : i32
    %c0_i32_0 = arith.constant 0 : i32
    return %arg0, %c0_i32 : i32, i32
  }
  func.func @transform_1(%arg0: i32) -> (i32, i32, i32) {
    %c0_i32 = arith.constant 0 : i32
    %c0_i32_0 = arith.constant 0 : i32
    %c0_i32_1 = arith.constant 0 : i32
    %c0_i32_2 = arith.constant 0 : i32
    return %c0_i32, %c0_i32_0, %c0_i32_1 : i32, i32, i32
  }
  func.func @transform_2(%arg0: i32) -> (i32, i32) {
    %c0_i32 = arith.constant 0 : i32
    %c0_i32_0 = arith.constant 0 : i32
    %c0_i32_1 = arith.constant 0 : i32
    return %c0_i32, %c0_i32_0 : i32, i32
  }
  func.func @transform_3(%arg0: i32) -> (i32, i32) {
    %c0_i32 = arith.constant 0 : i32
    %c0_i32_0 = arith.constant 0 : i32
    return %arg0, %c0_i32 : i32, i32
  }
}

</mosaic_0001>

<bundles_post_ra>
// kernel: mmdl_forward.1
= control target key start
LH: loop header
LB: loop body
LE: loop exit
PB: predicated region body
PF: predicated region fallthrough
CT: control target
= control target key end

     0   :  { %8 = vsyncpa [#allocation3], 0  ;;  %s692_s12 = smov [#allocation2]   ;;  %s778_s0 = inlined_call_operand.vmem [shape: bf16[8,128], index: 0, kind: input, shape index: {}]   ;;  %s779_s1 = inlined_call_operand.hbm [shape: bf16[4,128,128], index: 1, kind: input, shape index: {}]   ;;  %s780_s2 = inlined_call_operand.vmem [shape: f32[4,128], index: 2, kind: input, shape index: {}]   ;;  %s781_s3 = inlined_call_operand.vmem [shape: f32[8,128], index: 3, kind: output, shape index: {}]  }
   0x1   :  { %s16_s13 = sshll.u32 %s692_s12, 4  ;;  %s17_s13 = int_to_ptr.vmem [resolvable:$true] %s16_s13 }
   0x2   :  { %s678_s14 = scalar_lea.vmem %s17_s13, 4096  ;;  %p683_p1 = scmp.lt.s32.totalorder %s17_s13, %s17_s13 }
   0x3   :  { %p679_p0 = scmp.ne.s32.totalorder %s17_s13, %s678_s14  ;;  %p684_p2 = scmp.lt.s32.totalorder %s678_s14, %s678_s14 }
   0x5   :  { %p685_p3 = por %p684_p2, %p683_p1 }
   0x7   :  { %p686_p4 = pnand %p685_p3, %p679_p0 }
   0x9   :  { %689 = shalt.err (!%p686_p4)
}
   0xa   :  { %s693_s15 = smov 64   ;;  %s694_s16 = smov 4  }
   0xb   :  { %22 = dma.hbm_to_vmem [thread:$0]  %s779_s1, 4096, %s17_s13, [#allocation3], %s693_s15, %s693_s15, %s694_s16  }
   0xc   :  { %690 = dma.done.wait [#allocation3], 4096  }
   0xd   :  { %691 = vsyncadd [#allocation3], 4294963200  ;;  %v695_v0 = vmov 0.0   ;;  %vm696_vm0 = vmmov 0   ;;  %v638_v1 = vld [vmem:[#allocation2 + $0x38] sm:$0xff]   ;;  %v639_v2 = vld [vmem:[#allocation2 + $0x30] sm:$0xff]  }
   0xe   :  { %553 = vmatprep.subr.bf16.mxu0 %v695_v0  ;;  %569 = vmatprep.mubr.msk.bf16.mxu0 %vm696_vm0, %v695_v0  ;;  %v640_v3 = vld [vmem:[#allocation2 + $0x28] sm:$0xff]   ;;  %v646_v4 = vld [vmem:[#allocation2 + $0x78] sm:$0xff]   ;;  %v641_v5 = vld [vmem:[#allocation2 + $0x20] sm:$0xff]  }
   0xf   :  { %573 = vmatprep.subr.bf16.mxu1 %v695_v0  ;;  %589 = vmatprep.mubr.msk.bf16.mxu1 %vm696_vm0, %v695_v0  ;;  %v647_v6 = vld [vmem:[#allocation2 + $0x70] sm:$0xff]   ;;  %v642_v7 = vld [vmem:[#allocation2 + $0x18] sm:$0xff]   ;;  %v648_v8 = vld [vmem:[#allocation2 + $0x68] sm:$0xff]  }
  0x10   :  { %554 = vmatpush3.bf16.msra.mxu0 %v638_v1  ;;  %574 = vmatpush3.bf16.msra.mxu1 %v646_v4  ;;  %v643_v9 = vld [vmem:[#allocation2 + $0x10] sm:$0xff]   ;;  %v649_v10 = vld [vmem:[#allocation2 + $0x60] sm:$0xff]   ;;  %v644_v11 = vld [vmem:[#allocation2 + $0x8] sm:$0xff]  }
  0x11   :  { %555 = vmatprep.subr.bf16.mxu0 %v695_v0  ;;  %575 = vmatprep.subr.bf16.mxu1 %v695_v0  ;;  %v650_v12 = vld [vmem:[#allocation2 + $0x58] sm:$0xff]   ;;  %v645_v13 = vld [vmem:[#allocation2] sm:$0xff]   ;;  %v651_v14 = vld [vmem:[#allocation2 + $0x50] sm:$0xff]  }
  0x12   :  { %v29_v15 = vld [vmem:[%s778_s0] sm:$0xf]  ;;  %v652_v16 = vld [vmem:[#allocation2 + $0x48] sm:$0xff]   ;;  %v654_v18 = vld [vmem:[#allocation2 + $0xb8] sm:$0xff]  }
  0x13   :  { %v653_v17 = vld [vmem:[#allocation2 + $0x40] sm:$0xff]   ;;  %v655_v19 = vld [vmem:[#allocation2 + $0xb0] sm:$0xff]   ;;  %v656_v20 = vld [vmem:[#allocation2 + $0xa8] sm:$0xff]  }
  0x14   :  { %556 = vmatpush3.bf16.msra.mxu0 %v639_v2  ;;  %576 = vmatpush3.bf16.msra.mxu1 %v647_v6  ;;  %v657_v21 = vld [vmem:[#allocation2 + $0xa0] sm:$0xff]   ;;  %v658_v22 = vld [vmem:[#allocation2 + $0x98] sm:$0xff]   ;;  %v659_v23 = vld [vmem:[#allocation2 + $0x90] sm:$0xff]  }
  0x15   :  { %557 = vmatprep.subr.bf16.mxu0 %v695_v0  ;;  %577 = vmatprep.subr.bf16.mxu1 %v695_v0  ;;  %v481_v24 = vld [vmem:[%s780_s2] ss:$0 sm:$0xff]  ;;  %v660_v32 = vld [vmem:[#allocation2 + $0x88] sm:$0xff]   ;;  %v662_v34 = vld [vmem:[#allocation2 + $0xf8] sm:$0xff]  }
  0x16   :  { %v661_v33 = vld [vmem:[#allocation2 + $0x80] sm:$0xff]   ;;  %v663_v35 = vld [vmem:[#allocation2 + $0xf0] sm:$0xff]   ;;  %v664_v36 = vld [vmem:[#allocation2 + $0xe8] sm:$0xff]  }
  0x17   :  { %v665_v37 = vld [vmem:[#allocation2 + $0xe0] sm:$0xff]   ;;  %v666_v38 = vld [vmem:[#allocation2 + $0xd8] sm:$0xff]   ;;  %v667_v39 = vld [vmem:[#allocation2 + $0xd0] sm:$0xff]  }
  0x18   :  { %558 = vmatpush3.bf16.msra.mxu0 %v640_v3  ;;  %578 = vmatpush3.bf16.msra.mxu1 %v648_v8  ;;  %v490_v40 = vld [vmem:[%s780_s2 + $0x1] ss:$0 sm:$0xff]  ;;  %v668_v48 = vld [vmem:[#allocation2 + $0xc8] sm:$0xff]   ;;  %v499_v50 = vld [vmem:[%s780_s2 + $0x2] ss:$0 sm:$0xff] }
  0x19   :  { %559 = vmatprep.subr.bf16.mxu0 %v695_v0  ;;  %579 = vmatprep.subr.bf16.mxu1 %v695_v0  ;;  %v669_v49 = vld [vmem:[#allocation2 + $0xc0] sm:$0xff]  }
  0x1a   :  { %v508_v58 = vld [vmem:[%s780_s2 + $0x3] ss:$0 sm:$0xff] }
  0x1c   :  { %560 = vmatpush3.bf16.msra.mxu0 %v641_v5  ;;  %580 = vmatpush3.bf16.msra.mxu1 %v649_v10 }
  0x1d   :  { %561 = vmatprep.subr.bf16.mxu0 %v695_v0  ;;  %581 = vmatprep.subr.bf16.mxu1 %v695_v0 }
  0x20   :  { %562 = vmatpush3.bf16.msra.mxu0 %v642_v7  ;;  %582 = vmatpush3.bf16.msra.mxu1 %v650_v12 }
  0x21   :  { %563 = vmatprep.subr.bf16.mxu0 %v695_v0  ;;  %583 = vmatprep.subr.bf16.mxu1 %v695_v0 }
  0x24   :  { %564 = vmatpush3.bf16.msra.mxu0 %v643_v9  ;;  %584 = vmatpush3.bf16.msra.mxu1 %v651_v14 }
  0x25   :  { %565 = vmatprep.subr.bf16.mxu0 %v695_v0  ;;  %585 = vmatprep.subr.bf16.mxu1 %v695_v0 }
  0x28   :  { %566 = vmatpush3.bf16.msra.mxu0 %v644_v11  ;;  %586 = vmatpush3.bf16.msra.mxu1 %v652_v16 }
  0x29   :  { %567 = vmatprep.subr.bf16.mxu0 %v695_v0  ;;  %587 = vmatprep.subr.bf16.mxu1 %v695_v0 }
  0x2c   :  { %568 = vmatpush3.bf16.msra.mxu0 %v645_v13  ;;  %588 = vmatpush3.bf16.msra.mxu1 %v653_v17 }
  0x2d   :  { %593 = vmatprep.subr.bf16.mxu0 %v695_v0  ;;  %613 = vmatprep.subr.bf16.mxu1 %v695_v0 }
  0x2f   :  { %570 = vmatmul.mubr.bf16.vlgmr.msra.gmra.mxu0 %v29_v15 }
  0x30   :  { %609 = vmatprep.mubr.msk.bf16.mxu0 %vm696_vm0, %v695_v0  ;;  %594 = vmatpush3.bf16.msra.mxu0 %v654_v18 }
  0x31   :  { %595 = vmatprep.subr.bf16.mxu0 %v695_v0 }
  0x34   :  { %596 = vmatpush3.bf16.msra.mxu0 %v655_v19 }
  0x35   :  { %597 = vmatprep.subr.bf16.mxu0 %v695_v0 }
  0x38   :  { %598 = vmatpush3.bf16.msra.mxu0 %v656_v20 }
  0x39   :  { %599 = vmatprep.subr.bf16.mxu0 %v695_v0 }
  0x3c   :  { %600 = vmatpush3.bf16.msra.mxu0 %v657_v21 }
  0x3d   :  { %601 = vmatprep.subr.bf16.mxu0 %v695_v0 }
  0x40   :  { %602 = vmatpush3.bf16.msra.mxu0 %v658_v22 }
  0x41   :  { %603 = vmatprep.subr.bf16.mxu0 %v695_v0 }
  0x44   :  { %604 = vmatpush3.bf16.msra.mxu0 %v659_v23 }
  0x45   :  { %605 = vmatprep.subr.bf16.mxu0 %v695_v0 }
  0x48   :  { %606 = vmatpush3.bf16.msra.mxu0 %v660_v32 }
  0x49   :  { %607 = vmatprep.subr.bf16.mxu0 %v695_v0 }
  0x4c   :  { %608 = vmatpush3.bf16.msra.mxu0 %v661_v33 }
  0xef   :  { %v133_v25 = vpop.f32.mrf.mxu0 }
  0xf0   :  { %v134_v26 = vadd.f32 %v481_v24, %v133_v25 }
  0xf1   :  { %v571_v27 = vpop.f32.mrf.mxu0 }
  0xf2   :  { %v139_v28 = vmax.f32 %v134_v26, 0.0 }
  0xf3   :  { %v136_v29 = vpop.f32.mrf.mxu0 }
  0xf4   :  { %v140_v30 = vpack.c.bf16 %v139_v28, %v139_v28 }
  0xf5   :  { %v572_v31 = vpop.f32.mrf.mxu0 }
  0xf6   :  { %590 = vmatmul.mubr.bf16.vlgmr.msra.gmra.mxu1 %v140_v30 }
  0xf7   :  { %629 = vmatprep.mubr.msk.bf16.mxu1 %vm696_vm0, %v695_v0  ;;  %614 = vmatpush3.bf16.msra.mxu1 %v662_v34 }
  0xf8   :  { %615 = vmatprep.subr.bf16.mxu1 %v695_v0 }
  0xfb   :  { %616 = vmatpush3.bf16.msra.mxu1 %v663_v35 }
  0xfc   :  { %617 = vmatprep.subr.bf16.mxu1 %v695_v0 }
  0xff   :  { %618 = vmatpush3.bf16.msra.mxu1 %v664_v36 }
 0x100   :  { %619 = vmatprep.subr.bf16.mxu1 %v695_v0 }
 0x103   :  { %620 = vmatpush3.bf16.msra.mxu1 %v665_v37 }
 0x104   :  { %621 = vmatprep.subr.bf16.mxu1 %v695_v0 }
 0x107   :  { %622 = vmatpush3.bf16.msra.mxu1 %v666_v38 }
 0x108   :  { %623 = vmatprep.subr.bf16.mxu1 %v695_v0 }
 0x10b   :  { %624 = vmatpush3.bf16.msra.mxu1 %v667_v39 }
 0x10c   :  { %625 = vmatprep.subr.bf16.mxu1 %v695_v0 }
 0x10f   :  { %626 = vmatpush3.bf16.msra.mxu1 %v668_v48 }
 0x110   :  { %627 = vmatprep.subr.bf16.mxu1 %v695_v0 }
 0x113   :  { %628 = vmatpush3.bf16.msra.mxu1 %v669_v49 }
 0x1b6   :  { %v245_v41 = vpop.f32.mrf.mxu1 }
 0x1b7   :  { %v246_v42 = vadd.f32 %v490_v40, %v245_v41 }
 0x1b8   :  { %v591_v43 = vpop.f32.mrf.mxu1 }
 0x1b9   :  { %v251_v44 = vmax.f32 %v246_v42, 0.0 }
 0x1ba   :  { %v248_v45 = vpop.f32.mrf.mxu1 }
 0x1bb   :  { %v252_v46 = vpack.c.bf16 %v251_v44, %v251_v44 }
 0x1bc   :  { %v592_v47 = vpop.f32.mrf.mxu1 }
 0x1bd   :  { %610 = vmatmul.mubr.bf16.vlgmr.msra.gmra.mxu0 %v252_v46 }
 0x27d   :  { %v357_v51 = vpop.f32.mrf.mxu0 }
 0x27e   :  { %v358_v52 = vadd.f32 %v499_v50, %v357_v51 }
 0x27f   :  { %v611_v53 = vpop.f32.mrf.mxu0 }
 0x280   :  { %v363_v54 = vmax.f32 %v358_v52, 0.0 }
 0x281   :  { %v360_v55 = vpop.f32.mrf.mxu0 }
 0x282   :  { %v364_v56 = vpack.c.bf16 %v363_v54, %v363_v54 }
 0x283   :  { %v612_v57 = vpop.f32.mrf.mxu0 }
 0x284   :  { %630 = vmatmul.mubr.bf16.vlgmr.msra.gmra.mxu1 %v364_v56 }
 0x344   :  { %v469_v59 = vpop.f32.mrf.mxu1 }
 0x345   :  { %v470_v60 = vadd.f32 %v508_v58, %v469_v59 }
 0x346   :  { %v631_v61 = vpop.f32.mrf.mxu1 }
 0x347   :  { %475 = vst [vmem:[%s781_s3] sm:$0xff] %v470_v60 }
 0x348   :  { %v472_v62 = vpop.f32.mrf.mxu1 }
 0x34a   :  { %v632_v63 = vpop.f32.mrf.mxu1 }
 0x34b   :  { %480 = vsyncpa [#allocation3], 1 }

</bundles_post_ra>
